<compile_context>
chip_gen: v6e
topology: v6e:2x2x1
jax: 0.10.0
libtpu: 0.0.40
codegen_flags: <defaults>
</compile_context>

<pallas_src>
import math
from functools import partial

import jax
import jax.numpy as jnp
import numpy as np
from jax.experimental import pallas as pl
from jax.experimental.pallas import tpu as pltpu


# -------------------------- kernel: single KV block -------------------------
def _qkv_attn_single_kernel(q_ref, k_ref, v_ref, o_ref, *, scale, block_b):
    # q_ref/o_ref: [Bb, C, tq]   k_ref/v_ref: [Bb, C, T]  (whole KV sequence)
    for h in range(block_b):
        q = q_ref[h] * scale                              # [C, tq], input dtype
        k = k_ref[h]                                      # [C, T]
        v = v_ref[h]                                      # [C, T]

        # s[s, t] = sum_c k[c, s] * q[c, t]  (== K^T Q), f32 accumulate on MXU.
        s = jax.lax.dot_general(
            k, q, dimension_numbers=(((0,), (0,)), ((), ())),
            preferred_element_type=jnp.float32)           # [T, tq] f32

        m = jnp.max(s, axis=0, keepdims=True)             # [1, tq]
        p = jnp.exp(s - m)                                # [T, tq] f32
        denom = jnp.sum(p, axis=0, keepdims=True)         # [1, tq]

        # pv[c, t] = sum_s v[c, s] * p[s, t] -> lane-dense [C, tq]; p is cast
        # back to the input dtype (matches th.softmax(...).type(weight.dtype)).
        pv = jnp.dot(v, p.astype(v.dtype),
                     preferred_element_type=jnp.float32)  # [C, tq] f32
        # Reciprocal on the narrow [1, tq] stats, broadcast multiply into [C, tq].
        o_ref[h] = (pv * (1.0 / denom)).astype(o_ref.dtype)


# ----------------------- kernel: multi KV block (flash) ---------------------
def _qkv_attn_flash_kernel(q_ref, k_ref, v_ref, o_ref, m_ref, l_ref, acc_ref,
                           *, scale, block_b):
    # q_ref/o_ref: [Bb, C, tq]   k_ref/v_ref: [Bb, C, tk]
    # m_ref/l_ref: [Bb, 1, tq]   acc_ref:     [Bb, C, tq]   (f32 scratch)
    kv_idx = pl.program_id(2)

    @pl.when(kv_idx == 0)
    def _init():
        m_ref[...] = jnp.full_like(m_ref, -jnp.inf)
        l_ref[...] = jnp.zeros_like(l_ref)
        acc_ref[...] = jnp.zeros_like(acc_ref)

    # Static unroll over the heads packed into this block.
    for h in range(block_b):
        q = q_ref[h] * scale                              # [C, tq]
        k = k_ref[h]                                      # [C, tk]
        v = v_ref[h]                                      # [C, tk]

        s = jax.lax.dot_general(
            k, q, dimension_numbers=(((0,), (0,)), ((), ())),
            preferred_element_type=jnp.float32)           # [tk, tq] f32

        m_prev = m_ref[h]                                 # [1, tq]
        l_prev = l_ref[h]
        m_new = jnp.maximum(m_prev, jnp.max(s, axis=0, keepdims=True))
        alpha = jnp.exp(m_prev - m_new)                   # [1, tq]
        p = jnp.exp(s - m_new)                            # [tk, tq] f32

        l_ref[h] = alpha * l_prev + jnp.sum(p, axis=0, keepdims=True)
        pv = jnp.dot(v, p.astype(v.dtype),
                     preferred_element_type=jnp.float32)  # [C, tq] f32
        acc_ref[h] = alpha * acc_ref[h] + pv
        m_ref[h] = m_new

    @pl.when(kv_idx == pl.num_programs(2) - 1)
    def _finalize():
        # Deferred normalisation: one reciprocal on the narrow [Bb,1,tq] stats
        # in the epilogue, broadcast-multiplied into the wide accumulator.
        o_ref[...] = (acc_ref[...] * (1.0 / l_ref[...])).astype(o_ref.dtype)


# --------------------------------- wrapper ----------------------------------
def _pick_seq_tile(length, target):
    """Largest multiple of 128 that divides `length` and is <= target; else the
    full length (lane-axis blocks must be 128-multiples or full-extent)."""
    if length <= target:
        return length
    best = 0
    t = 128
    while t <= target:
        if length % t == 0:
            best = t
        t += 128
    return best if best else length


def _pick_block_b(B, ch, tq, tk, itemsize, budget_bytes=4 << 20, max_b=8):
    """Heads packed per grid step: amortise step overhead while keeping the
    per-step working set tiny (safe for v5e's 16 MiB scoped default and v7x's
    64 MiB physical VMEM)."""
    per_head = (
        2 * itemsize * (2 * ch * tq + 2 * ch * tk)   # double-buffered q/out + k/v tiles
        + 4 * (ch * tq + 2 * tq)                     # f32 acc + m + l scratch
        + 2 * 4 * (tk * tq)                          # f32 score / exp intermediates
    )
    bb = int(max(1, min(B, max_b, budget_bytes // max(per_head, 1))))
    while B % bb:
        bb -= 1
    return bb


def qkv_attention(qkv, n_heads, *, block_q=None, block_k=None, block_b=None,
                  vmem_limit_bytes=32 * 1024 * 1024):
    """qkv: [N, 3*H*C, T] -> [N, H*C, T]   (matches QKVAttention.forward)."""
    bs, width, length = qkv.shape
    assert width % (3 * n_heads) == 0
    ch = width // (3 * n_heads)
    B = bs * n_heads

    # Native channels-first layout everywhere: no wrapper transposes (each one
    # would cost a full extra HBM read+write pass over a [B, T, C] array).
    q, k, v = jnp.split(qkv, 3, axis=1)            # each [N, H*C, T]
    q = q.reshape(B, ch, length)
    k = k.reshape(B, ch, length)
    v = v.reshape(B, ch, length)

    # PyTorch scales q and k each by ch**-0.25; fold both into one pre-dot
    # scale of 1/sqrt(ch) applied to the (narrow) q tile.
    scale = 1.0 / math.sqrt(ch)

    tq = block_q if block_q is not None else _pick_seq_tile(length, 256)
    tk = block_k if block_k is not None else _pick_seq_tile(length, 512)
    assert length % tq == 0 and length % tk == 0, (length, tq, tk)
    bb = block_b if block_b is not None else _pick_block_b(
        B, ch, tq, tk, qkv.dtype.itemsize)
    assert B % bb == 0, (B, bb)

    num_kv = length // tk

    if num_kv == 1:
        # Whole KV sequence in one tile: direct softmax, no scratch.
        out = pl.pallas_call(
            partial(_qkv_attn_single_kernel, scale=scale, block_b=bb),
            out_shape=jax.ShapeDtypeStruct((B, ch, length), qkv.dtype),
            grid_spec=pltpu.PrefetchScalarGridSpec(
                num_scalar_prefetch=0,
                grid=(B // bb, length // tq),
                in_specs=[
                    pl.BlockSpec((bb, ch, tq), lambda b, i: (b, 0, i)),   # q
                    pl.BlockSpec((bb, ch, tk), lambda b, i: (b, 0, 0)),   # k
                    pl.BlockSpec((bb, ch, tk), lambda b, i: (b, 0, 0)),   # v
                ],
                out_specs=pl.BlockSpec((bb, ch, tq), lambda b, i: (b, 0, i))),
            compiler_params=pltpu.CompilerParams(
                dimension_semantics=("parallel", "parallel"),
                vmem_limit_bytes=vmem_limit_bytes),
        )(q, k, v)
    else:
        # Online softmax across KV tiles (reduction axis last, "arbitrary").
        out = pl.pallas_call(
            partial(_qkv_attn_flash_kernel, scale=scale, block_b=bb),
            out_shape=jax.ShapeDtypeStruct((B, ch, length), qkv.dtype),
            grid_spec=pltpu.PrefetchScalarGridSpec(
                num_scalar_prefetch=0,
                grid=(B // bb, length // tq, num_kv),
                in_specs=[
                    pl.BlockSpec((bb, ch, tq), lambda b, i, j: (b, 0, i)),   # q
                    pl.BlockSpec((bb, ch, tk), lambda b, i, j: (b, 0, j)),   # k
                    pl.BlockSpec((bb, ch, tk), lambda b, i, j: (b, 0, j)),   # v
                ],
                out_specs=pl.BlockSpec((bb, ch, tq), lambda b, i, j: (b, 0, i)),
                scratch_shapes=[
                    pltpu.VMEM((bb, 1, tq), jnp.float32),    # running max  m
                    pltpu.VMEM((bb, 1, tq), jnp.float32),    # running sum  l
                    pltpu.VMEM((bb, ch, tq), jnp.float32),   # unnormalised acc
                ]),
            compiler_params=pltpu.CompilerParams(
                dimension_semantics=("parallel", "parallel", "arbitrary"),
                vmem_limit_bytes=vmem_limit_bytes),
        )(q, k, v)

    return out.reshape(bs, n_heads * ch, length)       # reshape only, no transpose


# ------------------------------ verification --------------------------------
def _reference_qkv_attention(qkv, n_heads):
    """Pure-JAX transcription of the PyTorch forward, for verification."""
    bs, width, length = qkv.shape
    ch = width // (3 * n_heads)
    q, k, v = jnp.split(qkv, 3, axis=1)
    q = q.reshape(bs * n_heads, ch, length)
    k = k.reshape(bs * n_heads, ch, length)
    v = v.reshape(bs * n_heads, ch, length)
    scale = 1.0 / math.sqrt(math.sqrt(ch))
    weight = jnp.einsum('bct,bcs->bts', q * scale, k * scale)
    weight = jax.nn.softmax(weight.astype(jnp.float32), axis=-1).astype(weight.dtype)
    a = jnp.einsum('bts,bcs->bct', weight, v)
    return a.reshape(bs, -1, length)


if __name__ == "__main__":
    key = jax.random.PRNGKey(0)
    k1, k2, k3 = jax.random.split(key, 3)

    # Tolerance note: the MXU may run f32 matmuls with reduced-precision passes
    # under default matmul precision, and the online-softmax reassociates the
    # reduction, so agreement with the dense reference is at the ~1e-3 level in
    # the worst case; genuine kernel bugs produce O(0.1-1) errors.
    RTOL = ATOL = 5e-3

    # Case 1: tiny module-consistent shape — N=2 batches, H=2 heads, C=16 per
    # head, T=16 tokens -> qkv width = 3*H*C = 96.  Single-pass kernel path.
    n_heads = 2
    N, C, T = 2, 16, 16
    qkv = jax.random.normal(k1, (N, 3 * n_heads * C, T), dtype=jnp.float32)
    out = jax.block_until_ready(qkv_attention(qkv, n_heads))
    ref = _reference_qkv_attention(qkv, n_heads)
    assert out.shape == (N, n_heads * C, T), out.shape
    np.testing.assert_allclose(np.asarray(out), np.asarray(ref),
                               rtol=RTOL, atol=ATOL)

    # Case 2: explicit 128-wide tiles so the online softmax (flash path) is
    # exercised across multiple KV steps and query tiles.
    T2 = 256
    qkv2 = jax.random.normal(k2, (N, 3 * n_heads * C, T2), dtype=jnp.float32)
    out2 = jax.block_until_ready(
        qkv_attention(qkv2, n_heads, block_q=128, block_k=128))
    ref2 = _reference_qkv_attention(qkv2, n_heads)
    assert out2.shape == (N, n_heads * C, T2), out2.shape
    np.testing.assert_allclose(np.asarray(out2), np.asarray(ref2),
                               rtol=RTOL, atol=ATOL)

    # Case 3: longer sequence with default tiles -> single-KV-block kernel with
    # several query tiles (tq=256, tk=512) to exercise that path's tiling.
    T3 = 512
    qkv3 = jax.random.normal(k3, (N, 3 * n_heads * C, T3), dtype=jnp.float32)
    out3 = jax.block_until_ready(qkv_attention(qkv3, n_heads))
    ref3 = _reference_qkv_attention(qkv3, n_heads)
    assert out3.shape == (N, n_heads * C, T3), out3.shape
    np.testing.assert_allclose(np.asarray(out3), np.asarray(ref3),
                               rtol=RTOL, atol=ATOL)

    print("KERNEL_OK")
</pallas_src>

<mosaic_0001>
module attributes {stable_mosaic.version = 11 : i64} {
  func.func @_qkv_attn_single_kernel(%arg0: i32, %arg1: i32, %arg2: memref<4x16x16xf32, #tpu.memory_space<vmem>>, %arg3: memref<4x16x16xf32, #tpu.memory_space<vmem>>, %arg4: memref<4x16x16xf32, #tpu.memory_space<vmem>>, %arg5: memref<4x16x16xf32, #tpu.memory_space<vmem>>) attributes {dimension_semantics = [#tpu.dimension_semantics<parallel>, #tpu.dimension_semantics<parallel>], iteration_bounds = array<i64: 1, 1>, scalar_prefetch = 0 : i64, scratch_operands = 0 : i64, tpu.core_type = #tpu.core_type<tc>, window_params = [{transform_indices = @transform_0, window_bounds = array<i64: 4, 16, 16>}, {transform_indices = @transform_1, window_bounds = array<i64: 4, 16, 16>}, {transform_indices = @transform_2, window_bounds = array<i64: 4, 16, 16>}, {transform_indices = @transform_3, window_bounds = array<i64: 4, 16, 16>}]} {
    %c0 = arith.constant 0 : index
    %c0_0 = arith.constant 0 : index
    %c0_1 = arith.constant 0 : index
    %0 = vector.load %arg2[%c0, %c0_0, %c0_1] : memref<4x16x16xf32, #tpu.memory_space<vmem>>, vector<1x16x16xf32>
    %1 = vector.shape_cast %0 : vector<1x16x16xf32> to vector<16x16xf32>
    %cst = arith.constant 2.500000e-01 : f32
    %2 = vector.broadcast %cst : f32 to vector<16x16xf32>
    %3 = arith.mulf %1, %2 : vector<16x16xf32>
    %c0_2 = arith.constant 0 : index
    %c0_3 = arith.constant 0 : index
    %c0_4 = arith.constant 0 : index
    %4 = vector.load %arg3[%c0_2, %c0_3, %c0_4] : memref<4x16x16xf32, #tpu.memory_space<vmem>>, vector<1x16x16xf32>
    %5 = vector.shape_cast %4 : vector<1x16x16xf32> to vector<16x16xf32>
    %c0_5 = arith.constant 0 : index
    %c0_6 = arith.constant 0 : index
    %c0_7 = arith.constant 0 : index
    %6 = vector.load %arg4[%c0_5, %c0_6, %c0_7] : memref<4x16x16xf32, #tpu.memory_space<vmem>>, vector<1x16x16xf32>
    %7 = vector.shape_cast %6 : vector<1x16x16xf32> to vector<16x16xf32>
    %cst_8 = arith.constant dense<0.000000e+00> : vector<16x16xf32>
    %8 = tpu.matmul %5, %3, %cst_8 {dimension_numbers = #tpu.dot_dimension_numbers<[0], [0], [1], [1], [0, 1, 1, 1], [], []>} : vector<16x16xf32>, vector<16x16xf32>, vector<16x16xf32> -> vector<16x16xf32>
    %cst_9 = arith.constant dense<0xFF800000> : vector<16xf32>
    %9 = vector.multi_reduction <maximumf>, %8, %cst_9 [0] : vector<16x16xf32> to vector<16xf32>
    %10 = vector.shape_cast %9 : vector<16xf32> to vector<1x16xf32>
    %11 = vector.broadcast %10 : vector<1x16xf32> to vector<16x16xf32>
    %12 = arith.subf %8, %11 : vector<16x16xf32>
    %13 = math.exp %12 : vector<16x16xf32>
    %cst_10 = arith.constant dense<0.000000e+00> : vector<16xf32>
    %14 = vector.multi_reduction <add>, %13, %cst_10 [0] : vector<16x16xf32> to vector<16xf32>
    %15 = vector.shape_cast %14 : vector<16xf32> to vector<1x16xf32>
    %cst_11 = arith.constant dense<0.000000e+00> : vector<16x16xf32>
    %16 = tpu.matmul %7, %13, %cst_11 {dimension_numbers = #tpu.dot_dimension_numbers<[1], [0], [0], [1], [0, 0, 1, 1], [], []>} : vector<16x16xf32>, vector<16x16xf32>, vector<16x16xf32> -> vector<16x16xf32>
    %cst_12 = arith.constant 1.000000e+00 : f32
    %17 = vector.broadcast %cst_12 : f32 to vector<1x16xf32>
    %18 = arith.divf %17, %15 : vector<1x16xf32>
    %19 = vector.broadcast %18 : vector<1x16xf32> to vector<16x16xf32>
    %20 = arith.mulf %16, %19 : vector<16x16xf32>
    %c0_13 = arith.constant 0 : index
    %c0_14 = arith.constant 0 : index
    %c0_15 = arith.constant 0 : index
    %21 = vector.load %arg5[%c0_13, %c0_14, %c0_15] : memref<4x16x16xf32, #tpu.memory_space<vmem>>, vector<1x16x16xf32>
    %22 = vector.shape_cast %21 : vector<1x16x16xf32> to vector<16x16xf32>
    %23 = vector.shape_cast %20 : vector<16x16xf32> to vector<1x16x16xf32>
    tpu.vector_store %arg5[%c0_13, %c0_14, %c0_15], %23 {strides = array<i32>} : memref<4x16x16xf32, #tpu.memory_space<vmem>>, vector<1x16x16xf32>,
    %c1 = arith.constant 1 : index
    %c0_16 = arith.constant 0 : index
    %c0_17 = arith.constant 0 : index
    %24 = vector.load %arg2[%c1, %c0_16, %c0_17] : memref<4x16x16xf32, #tpu.memory_space<vmem>>, vector<1x16x16xf32>
    %25 = vector.shape_cast %24 : vector<1x16x16xf32> to vector<16x16xf32>
    %cst_18 = arith.constant 2.500000e-01 : f32
    %26 = vector.broadcast %cst_18 : f32 to vector<16x16xf32>
    %27 = arith.mulf %25, %26 : vector<16x16xf32>
    %c1_19 = arith.constant 1 : index
    %c0_20 = arith.constant 0 : index
    %c0_21 = arith.constant 0 : index
    %28 = vector.load %arg3[%c1_19, %c0_20, %c0_21] : memref<4x16x16xf32, #tpu.memory_space<vmem>>, vector<1x16x16xf32>
    %29 = vector.shape_cast %28 : vector<1x16x16xf32> to vector<16x16xf32>
    %c1_22 = arith.constant 1 : index
    %c0_23 = arith.constant 0 : index
    %c0_24 = arith.constant 0 : index
    %30 = vector.load %arg4[%c1_22, %c0_23, %c0_24] : memref<4x16x16xf32, #tpu.memory_space<vmem>>, vector<1x16x16xf32>
    %31 = vector.shape_cast %30 : vector<1x16x16xf32> to vector<16x16xf32>
    %cst_25 = arith.constant dense<0.000000e+00> : vector<16x16xf32>
    %32 = tpu.matmul %29, %27, %cst_25 {dimension_numbers = #tpu.dot_dimension_numbers<[0], [0], [1], [1], [0, 1, 1, 1], [], []>} : vector<16x16xf32>, vector<16x16xf32>, vector<16x16xf32> -> vector<16x16xf32>
    %cst_26 = arith.constant dense<0xFF800000> : vector<16xf32>
    %33 = vector.multi_reduction <maximumf>, %32, %cst_26 [0] : vector<16x16xf32> to vector<16xf32>
    %34 = vector.shape_cast %33 : vector<16xf32> to vector<1x16xf32>
    %35 = vector.broadcast %34 : vector<1x16xf32> to vector<16x16xf32>
    %36 = arith.subf %32, %35 : vector<16x16xf32>
    %37 = math.exp %36 : vector<16x16xf32>
    %cst_27 = arith.constant dense<0.000000e+00> : vector<16xf32>
    %38 = vector.multi_reduction <add>, %37, %cst_27 [0] : vector<16x16xf32> to vector<16xf32>
    %39 = vector.shape_cast %38 : vector<16xf32> to vector<1x16xf32>
    %cst_28 = arith.constant dense<0.000000e+00> : vector<16x16xf32>
    %40 = tpu.matmul %31, %37, %cst_28 {dimension_numbers = #tpu.dot_dimension_numbers<[1], [0], [0], [1], [0, 0, 1, 1], [], []>} : vector<16x16xf32>, vector<16x16xf32>, vector<16x16xf32> -> vector<16x16xf32>
    %cst_29 = arith.constant 1.000000e+00 : f32
    %41 = vector.broadcast %cst_29 : f32 to vector<1x16xf32>
    %42 = arith.divf %41, %39 : vector<1x16xf32>
    %43 = vector.broadcast %42 : vector<1x16xf32> to vector<16x16xf32>
    %44 = arith.mulf %40, %43 : vector<16x16xf32>
    %c1_30 = arith.constant 1 : index
    %c0_31 = arith.constant 0 : index
    %c0_32 = arith.constant 0 : index
    %45 = vector.load %arg5[%c1_30, %c0_31, %c0_32] : memref<4x16x16xf32, #tpu.memory_space<vmem>>, vector<1x16x16xf32>
    %46 = vector.shape_cast %45 : vector<1x16x16xf32> to vector<16x16xf32>
    %47 = vector.shape_cast %44 : vector<16x16xf32> to vector<1x16x16xf32>
    tpu.vector_store %arg5[%c1_30, %c0_31, %c0_32], %47 {strides = array<i32>} : memref<4x16x16xf32, #tpu.memory_space<vmem>>, vector<1x16x16xf32>,
    %c2 = arith.constant 2 : index
    %c0_33 = arith.constant 0 : index
    %c0_34 = arith.constant 0 : index
    %48 = vector.load %arg2[%c2, %c0_33, %c0_34] : memref<4x16x16xf32, #tpu.memory_space<vmem>>, vector<1x16x16xf32>
    %49 = vector.shape_cast %48 : vector<1x16x16xf32> to vector<16x16xf32>
    %cst_35 = arith.constant 2.500000e-01 : f32
    %50 = vector.broadcast %cst_35 : f32 to vector<16x16xf32>
    %51 = arith.mulf %49, %50 : vector<16x16xf32>
    %c2_36 = arith.constant 2 : index
    %c0_37 = arith.constant 0 : index
    %c0_38 = arith.constant 0 : index
    %52 = vector.load %arg3[%c2_36, %c0_37, %c0_38] : memref<4x16x16xf32, #tpu.memory_space<vmem>>, vector<1x16x16xf32>
    %53 = vector.shape_cast %52 : vector<1x16x16xf32> to vector<16x16xf32>
    %c2_39 = arith.constant 2 : index
    %c0_40 = arith.constant 0 : index
    %c0_41 = arith.constant 0 : index
    %54 = vector.load %arg4[%c2_39, %c0_40, %c0_41] : memref<4x16x16xf32, #tpu.memory_space<vmem>>, vector<1x16x16xf32>
    %55 = vector.shape_cast %54 : vector<1x16x16xf32> to vector<16x16xf32>
    %cst_42 = arith.constant dense<0.000000e+00> : vector<16x16xf32>
    %56 = tpu.matmul %53, %51, %cst_42 {dimension_numbers = #tpu.dot_dimension_numbers<[0], [0], [1], [1], [0, 1, 1, 1], [], []>} : vector<16x16xf32>, vector<16x16xf32>, vector<16x16xf32> -> vector<16x16xf32>
    %cst_43 = arith.constant dense<0xFF800000> : vector<16xf32>
    %57 = vector.multi_reduction <maximumf>, %56, %cst_43 [0] : vector<16x16xf32> to vector<16xf32>
    %58 = vector.shape_cast %57 : vector<16xf32> to vector<1x16xf32>
    %59 = vector.broadcast %58 : vector<1x16xf32> to vector<16x16xf32>
    %60 = arith.subf %56, %59 : vector<16x16xf32>
    %61 = math.exp %60 : vector<16x16xf32>
    %cst_44 = arith.constant dense<0.000000e+00> : vector<16xf32>
    %62 = vector.multi_reduction <add>, %61, %cst_44 [0] : vector<16x16xf32> to vector<16xf32>
    %63 = vector.shape_cast %62 : vector<16xf32> to vector<1x16xf32>
    %cst_45 = arith.constant dense<0.000000e+00> : vector<16x16xf32>
    %64 = tpu.matmul %55, %61, %cst_45 {dimension_numbers = #tpu.dot_dimension_numbers<[1], [0], [0], [1], [0, 0, 1, 1], [], []>} : vector<16x16xf32>, vector<16x16xf32>, vector<16x16xf32> -> vector<16x16xf32>
    %cst_46 = arith.constant 1.000000e+00 : f32
    %65 = vector.broadcast %cst_46 : f32 to vector<1x16xf32>
    %66 = arith.divf %65, %63 : vector<1x16xf32>
    %67 = vector.broadcast %66 : vector<1x16xf32> to vector<16x16xf32>
    %68 = arith.mulf %64, %67 : vector<16x16xf32>
    %c2_47 = arith.constant 2 : index
    %c0_48 = arith.constant 0 : index
    %c0_49 = arith.constant 0 : index
    %69 = vector.load %arg5[%c2_47, %c0_48, %c0_49] : memref<4x16x16xf32, #tpu.memory_space<vmem>>, vector<1x16x16xf32>
    %70 = vector.shape_cast %69 : vector<1x16x16xf32> to vector<16x16xf32>
    %71 = vector.shape_cast %68 : vector<16x16xf32> to vector<1x16x16xf32>
    tpu.vector_store %arg5[%c2_47, %c0_48, %c0_49], %71 {strides = array<i32>} : memref<4x16x16xf32, #tpu.memory_space<vmem>>, vector<1x16x16xf32>,
    %c3 = arith.constant 3 : index
    %c0_50 = arith.constant 0 : index
    %c0_51 = arith.constant 0 : index
    %72 = vector.load %arg2[%c3, %c0_50, %c0_51] : memref<4x16x16xf32, #tpu.memory_space<vmem>>, vector<1x16x16xf32>
    %73 = vector.shape_cast %72 : vector<1x16x16xf32> to vector<16x16xf32>
    %cst_52 = arith.constant 2.500000e-01 : f32
    %74 = vector.broadcast %cst_52 : f32 to vector<16x16xf32>
    %75 = arith.mulf %73, %74 : vector<16x16xf32>
    %c3_53 = arith.constant 3 : index
    %c0_54 = arith.constant 0 : index
    %c0_55 = arith.constant 0 : index
    %76 = vector.load %arg3[%c3_53, %c0_54, %c0_55] : memref<4x16x16xf32, #tpu.memory_space<vmem>>, vector<1x16x16xf32>
    %77 = vector.shape_cast %76 : vector<1x16x16xf32> to vector<16x16xf32>
    %c3_56 = arith.constant 3 : index
    %c0_57 = arith.constant 0 : index
    %c0_58 = arith.constant 0 : index
    %78 = vector.load %arg4[%c3_56, %c0_57, %c0_58] : memref<4x16x16xf32, #tpu.memory_space<vmem>>, vector<1x16x16xf32>
    %79 = vector.shape_cast %78 : vector<1x16x16xf32> to vector<16x16xf32>
    %cst_59 = arith.constant dense<0.000000e+00> : vector<16x16xf32>
    %80 = tpu.matmul %77, %75, %cst_59 {dimension_numbers = #tpu.dot_dimension_numbers<[0], [0], [1], [1], [0, 1, 1, 1], [], []>} : vector<16x16xf32>, vector<16x16xf32>, vector<16x16xf32> -> vector<16x16xf32>
    %cst_60 = arith.constant dense<0xFF800000> : vector<16xf32>
    %81 = vector.multi_reduction <maximumf>, %80, %cst_60 [0] : vector<16x16xf32> to vector<16xf32>
    %82 = vector.shape_cast %81 : vector<16xf32> to vector<1x16xf32>
    %83 = vector.broadcast %82 : vector<1x16xf32> to vector<16x16xf32>
    %84 = arith.subf %80, %83 : vector<16x16xf32>
    %85 = math.exp %84 : vector<16x16xf32>
    %cst_61 = arith.constant dense<0.000000e+00> : vector<16xf32>
    %86 = vector.multi_reduction <add>, %85, %cst_61 [0] : vector<16x16xf32> to vector<16xf32>
    %87 = vector.shape_cast %86 : vector<16xf32> to vector<1x16xf32>
    %cst_62 = arith.constant dense<0.000000e+00> : vector<16x16xf32>
    %88 = tpu.matmul %79, %85, %cst_62 {dimension_numbers = #tpu.dot_dimension_numbers<[1], [0], [0], [1], [0, 0, 1, 1], [], []>} : vector<16x16xf32>, vector<16x16xf32>, vector<16x16xf32> -> vector<16x16xf32>
    %cst_63 = arith.constant 1.000000e+00 : f32
    %89 = vector.broadcast %cst_63 : f32 to vector<1x16xf32>
    %90 = arith.divf %89, %87 : vector<1x16xf32>
    %91 = vector.broadcast %90 : vector<1x16xf32> to vector<16x16xf32>
    %92 = arith.mulf %88, %91 : vector<16x16xf32>
    %c3_64 = arith.constant 3 : index
    %c0_65 = arith.constant 0 : index
    %c0_66 = arith.constant 0 : index
    %93 = vector.load %arg5[%c3_64, %c0_65, %c0_66] : memref<4x16x16xf32, #tpu.memory_space<vmem>>, vector<1x16x16xf32>
    %94 = vector.shape_cast %93 : vector<1x16x16xf32> to vector<16x16xf32>
    %95 = vector.shape_cast %92 : vector<16x16xf32> to vector<1x16x16xf32>
    tpu.vector_store %arg5[%c3_64, %c0_65, %c0_66], %95 {strides = array<i32>} : memref<4x16x16xf32, #tpu.memory_space<vmem>>, vector<1x16x16xf32>,
    return
  }
  func.func @transform_0(%arg0: i32, %arg1: i32) -> (i32, i32, i32) {
    %c0_i32 = arith.constant 0 : i32
    %c0_i32_0 = arith.constant 0 : i32
    return %arg0, %c0_i32, %arg1 : i32, i32, i32
  }
  func.func @transform_1(%arg0: i32, %arg1: i32) -> (i32, i32, i32) {
    %c0_i32 = arith.constant 0 : i32
    %c0_i32_0 = arith.constant 0 : i32
    %c0_i32_1 = arith.constant 0 : i32
    return %arg0, %c0_i32, %c0_i32_0 : i32, i32, i32
  }
  func.func @transform_2(%arg0: i32, %arg1: i32) -> (i32, i32, i32) {
    %c0_i32 = arith.constant 0 : i32
    %c0_i32_0 = arith.constant 0 : i32
    %c0_i32_1 = arith.constant 0 : i32
    return %arg0, %c0_i32, %c0_i32_0 : i32, i32, i32
  }
  func.func @transform_3(%arg0: i32, %arg1: i32) -> (i32, i32, i32) {
    %c0_i32 = arith.constant 0 : i32
    %c0_i32_0 = arith.constant 0 : i32
    return %arg0, %c0_i32, %arg1 : i32, i32, i32
  }
}

</mosaic_0001>

<bundles_post_ra>
// kernel: tpu_custom_call.1
= control target key start
LH: loop header
LB: loop body
LE: loop exit
PB: predicated region body
PF: predicated region fallthrough
CT: control target
= control target key end

     0   :  { %8 = vsyncpa [#allocation3], 0  ;;  %s1326_s0 = inlined_call_operand.hbm [shape: f32[4,16,16], index: 0, kind: input, shape index: {}]   ;;  %s1327_s1 = inlined_call_operand.hbm [shape: f32[4,16,16], index: 1, kind: input, shape index: {}]   ;;  %s1328_s2 = inlined_call_operand.hbm [shape: f32[4,16,16], index: 2, kind: input, shape index: {}]   ;;  %s1329_s3 = inlined_call_operand.hbm [shape: f32[4,16,16], index: 3, kind: output, shape index: {}]  }
   0x1   :  { %9 = vsyncpa [#allocation6], 0 }
   0x2   :  { %10 = vsyncpa [#allocation4], 0  ;;  %s1236_s12 = smov [#allocation5]   ;;  %s1237_s14 = smov [#allocation2]  }
   0x3   :  { %s28_s13 = sshll.u32 %s1236_s12, 4  ;;  %s16_s15 = sshll.u32 %s1237_s14, 4  ;;  %s29_s13 = int_to_ptr.vmem [resolvable:$true] %s28_s13  ;;  %s17_s15 = int_to_ptr.vmem [resolvable:$true] %s16_s15 }
   0x4   :  { %s1158_s16 = scalar_lea.vmem %s29_s13, 1024  ;;  %p1163_p1 = scmp.lt.s32.totalorder %s29_s13, %s29_s13 }
   0x5   :  { %p1159_p0 = scmp.ne.s32.totalorder %s29_s13, %s1158_s16  ;;  %p1164_p2 = scmp.lt.s32.totalorder %s1158_s16, %s1158_s16 }
   0x7   :  { %p1165_p3 = por %p1164_p2, %p1163_p1 }
   0x9   :  { %p1166_p4 = pnand %p1165_p3, %p1159_p0 }
   0xb   :  { %1169 = shalt.err (!%p1166_p4)
}
   0xc   :  { %s1238_s17 = smov 128   ;;  %s1239_s18 = smov 8  }
   0xd   :  { %34 = dma.hbm_to_vmem [thread:$0]  %s1327_s1, 1024, %s29_s13, [#allocation6], %s1238_s17, %s1238_s17, %s1239_s18  }
   0xe   :  { %s1178_s21 = scalar_lea.vmem %s17_s15, 1024  ;;  %p1183_p6 = scmp.lt.s32.totalorder %s17_s15, %s17_s15 }
   0xf   :  { %p1179_p5 = scmp.ne.s32.totalorder %s17_s15, %s1178_s21  ;;  %p1184_p7 = scmp.lt.s32.totalorder %s1178_s21, %s1178_s21 }
  0x11   :  { %p1185_p8 = por %p1184_p7, %p1183_p6 }
  0x13   :  { %p1186_p9 = pnand %p1185_p8, %p1179_p5 }
  0x15   :  { %1189 = shalt.err (!%p1186_p9)
}
  0x16   :  { %22 = dma.hbm_to_vmem [thread:$0]  %s1326_s0, 1024, %s17_s15, [#allocation3], %s1238_s17, %s1238_s17, %s1239_s18  }
  0x17   :  { %s1240_s24 = smov [#allocation7]  }
  0x18   :  { %s40_s25 = sshll.u32 %s1240_s24, 4  ;;  %s41_s25 = int_to_ptr.vmem [resolvable:$true] %s40_s25 }
  0x19   :  { %s1198_s26 = scalar_lea.vmem %s41_s25, 1024  ;;  %p1203_p11 = scmp.lt.s32.totalorder %s41_s25, %s41_s25 }
  0x1a   :  { %p1199_p10 = scmp.ne.s32.totalorder %s41_s25, %s1198_s26  ;;  %p1204_p12 = scmp.lt.s32.totalorder %s1198_s26, %s1198_s26 }
  0x1c   :  { %p1205_p13 = por %p1204_p12, %p1203_p11 }
  0x1e   :  { %p1206_p0 = pnand %p1205_p13, %p1199_p10 }
  0x20   :  { %1209 = shalt.err (!%p1206_p0)
}
  0x21   :  { %46 = dma.hbm_to_vmem [thread:$0]  %s1328_s2, 1024, %s41_s25, [#allocation6], %s1238_s17, %s1238_s17, %s1239_s18  }
  0x22   :  { %1230 = dma.done.wait [#allocation3], 1024  }
  0x23   :  { %1231 = vsyncadd [#allocation3], 4294966272 }
  0x24   :  { %1232 = dma.done.wait [#allocation6], 2048  }
  0x25   :  { %1233 = vsyncadd [#allocation6], 4294965248  ;;  %v60_v0 = vld [vmem:[#allocation5] sm:$0xff]  ;;  %v295_v1 = vld [vmem:[#allocation5 + $0x10] sm:$0xff]  ;;  %vm96_vm0 = vcmask 130048   ;;  %s1241_s0 = smov [#allocation8]  }
  0x26   :  { %64 = vxpose.xlu0.b32.start [1/2] (short) (narrow) %v60_v0, 16  ;;  %300 = vxpose.xlu1.b32.start [1/2] (short) (narrow) %v295_v1, 16  ;;  %v61_v2 = vld [vmem:[#allocation5 + $0x8] sm:$0xff]  ;;  %v296_v3 = vld [vmem:[#allocation5 + $0x18] sm:$0xff]  ;;  %v56_v6 = vld [vmem:[#allocation2] sm:$0xff]  ;;  %s1002_s2 = sshll.u32 %s1241_s0, 4  ;;  %s1003_s2 = int_to_ptr.vmem [resolvable:$true] %s1002_s2 }
  0x27   :  { %v57_v4 = vld [vmem:[#allocation2 + $0x8] sm:$0xff]  ;;  %v58_v7 = vmul.f32 0.25, %v56_v6  ;;  %v291_v8 = vld [vmem:[#allocation2 + $0x18] sm:$0xff]  ;;  %v531_v9 = vld [vmem:[#allocation5 + $0x20] sm:$0xff]  ;;  %s1210_s28 = scalar_lea.vmem %s1003_s2, 1024  ;;  %p1215_p2 = scmp.lt.s32.totalorder %s1003_s2, %s1003_s2 }
  0x28   :  { %v59_v5 = vmul.f32 0.25, %v57_v4  ;;  %v767_v10 = vld [vmem:[#allocation5 + $0x30] sm:$0xff]  ;;  %v293_v11 = vmul.f32 0.25, %v291_v8  ;;  %v532_v12 = vld [vmem:[#allocation5 + $0x28] sm:$0xff]  ;;  %v768_v13 = vld [vmem:[#allocation5 + $0x38] sm:$0xff]  ;;  %p1211_p1 = scmp.ne.s32.totalorder %s1003_s2, %s1210_s28  ;;  %p1216_p3 = scmp.lt.s32.totalorder %s1210_s28, %s1210_s28 }
  0x29   :  { %v290_v16 = vld [vmem:[#allocation2 + $0x10] sm:$0xff]  ;;  %v527_v17 = vld [vmem:[#allocation2 + $0x28] sm:$0xff]  ;;  %v526_v21 = vld [vmem:[#allocation2 + $0x20] sm:$0xff] }
  0x2a   :  { %65 = vxpose.xlu0.b32.end [2/2] (short) (narrow) %v61_v2, 16  ;;  %301 = vxpose.xlu1.b32.end [2/2] (short) (narrow) %v296_v3, 16  ;;  %v292_v18 = vmul.f32 0.25, %v290_v16  ;;  %v529_v22 = vmul.f32 0.25, %v527_v17  ;;  %v763_v23 = vld [vmem:[#allocation2 + $0x38] sm:$0xff]  ;;  %v528_v24 = vmul.f32 0.25, %v526_v21  ;;  %p1217_p4 = por %p1216_p3, %p1215_p2 }
  0x2b   :  { %1063 = vmatprep.subr.mxu0 %v59_v5  ;;  %v762_v27 = vld [vmem:[#allocation2 + $0x30] sm:$0xff]  ;;  %v765_v28 = vmul.f32 0.25, %v763_v23  ;;  %v62_v32 = vld [vmem:[#allocation7] sm:$0xff] }
  0x2c   :  { %1064 = vmatpush3.msra.mxu0 %v59_v5  ;;  %v764_v29 = vmul.f32 0.25, %v762_v27  ;;  %1074 = vmatprep.mubr.msk.f32.mxu1 %vm96_vm0, %v62_v32  ;;  %p1218_p5 = pnand %p1217_p4, %p1211_p1 }
  0x2d   :  { %1065 = vmatprep.subr.mxu0 %v58_v7 }
  0x2e   :  { %536 = vxpose.xlu0.b32.start [1/2] (short) (narrow) %v531_v9, 16  ;;  %772 = vxpose.xlu1.b32.start [1/2] (short) (narrow) %v767_v10, 16 }
  0x2f   :  { %1066 = vmatpush3.msra.mxu0 %v58_v7 }
  0x30   :  { %1077 = vmatprep.subr.mxu0 %v293_v11 }
  0x32   :  { %537 = vxpose.xlu0.b32.end [2/2] (short) (narrow) %v532_v12, 16  ;;  %773 = vxpose.xlu1.b32.end [2/2] (short) (narrow) %v768_v13, 16 }
  0xa2   :  { %v80_v14 = vpop.trf.xlu0  ;;  %v316_v15 = vpop.trf.xlu1 }
  0xa3   :  { %1067 = vmatprep.mubr.msk.f32.mxu0 %vm96_vm0, %v80_v14 }
  0xa6   :  { %v81_v19 = vpop.trf.xlu0  ;;  %v317_v20 = vpop.trf.xlu1 }
  0xa7   :  { %1068 = vmatmul.mubr.msk.f32.vlgmr.msra.gmra.mxu0 %vm96_vm0, %v81_v19 }
  0xa8   :  { %1078 = vmatpush3.msra.mxu0 %v293_v11  ;;  %1081 = vmatprep.mubr.msk.f32.mxu0 %vm96_vm0, %v316_v15 }
  0xa9   :  { %1079 = vmatprep.subr.mxu0 %v292_v18 }
  0xaa   :  { %v552_v25 = vpop.trf.xlu0  ;;  %1080 = vmatpush3.msra.mxu0 %v292_v18  ;;  %v788_v26 = vpop.trf.xlu1 }
  0xab   :  { %1082 = vmatmul.mubr.msk.f32.vlgmr.msra.gmra.mxu0 %vm96_vm0, %v317_v20  ;;  %1091 = vmatprep.subr.mxu0 %v529_v22 }
  0xac   :  { %1092 = vmatpush3.msra.mxu0 %v529_v22  ;;  %1095 = vmatprep.mubr.msk.f32.mxu0 %vm96_vm0, %v552_v25 }
  0xad   :  { %1093 = vmatprep.subr.mxu0 %v528_v24 }
  0xae   :  { %v553_v30 = vpop.trf.xlu0  ;;  %1094 = vmatpush3.msra.mxu0 %v528_v24  ;;  %v789_v31 = vpop.trf.xlu1 }
  0xaf   :  { %1096 = vmatmul.mubr.msk.f32.vlgmr.msra.gmra.mxu0 %vm96_vm0, %v553_v30  ;;  %1105 = vmatprep.subr.mxu0 %v765_v28 }
  0xb0   :  { %1106 = vmatpush3.msra.mxu0 %v765_v28  ;;  %1109 = vmatprep.mubr.msk.f32.mxu0 %vm96_vm0, %v788_v26 }
  0xb1   :  { %1107 = vmatprep.subr.mxu0 %v764_v29 }
  0xb2   :  { %1108 = vmatpush3.msra.mxu0 %v764_v29 }
  0xb3   :  { %1110 = vmatmul.mubr.msk.f32.vlgmr.msra.gmra.mxu0 %vm96_vm0, %v789_v31 }
 0x167   :  { %v1069_v33 = vpop.f32.mrf.mxu0 }
 0x168   :  { %v179_v35 = vsel %vm96_vm0, %v1069_v33, -inf }
 0x169   :  { %v169_v34 = vpop.f32.mrf.mxu0 }
 0x16a   :  { %v178_v36 = vsel %vm96_vm0, %v169_v34, -inf }
 0x16b   :  { %v180_v37 = vmax.f32 %v178_v36, %v179_v35  ;;  %v1083_v38 = vpop.f32.mrf.mxu0  ;;  %v298_v36 = vld [vmem:[#allocation7 + $0x10] sm:$0xff] }
 0x16c   :  { %v414_v41 = vsel %vm96_vm0, %v1083_v38, -inf }
 0x16d   :  { %v181_v39 = vrot.slane %v180_v37, 4  ;;  %v404_v40 = vpop.f32.mrf.mxu0 }
 0x16e   :  { %v413_v42 = vsel %vm96_vm0, %v404_v40, -inf }
 0x16f   :  { %v182_v43 = vmax.f32 %v180_v37, %v181_v39  ;;  %v415_v44 = vmax.f32 %v413_v42, %v414_v41  ;;  %v1097_v45 = vpop.f32.mrf.mxu0 }
 0x170   :  { %v650_v49 = vsel %vm96_vm0, %v1097_v45, -inf }
 0x171   :  { %v183_v46 = vrot.slane %v182_v43, 2  ;;  %v416_v47 = vrot.slane %v415_v44, 4  ;;  %v640_v48 = vpop.f32.mrf.mxu0 }
 0x172   :  { %v649_v50 = vsel %vm96_vm0, %v640_v48, -inf }
 0x173   :  { %v184_v51 = vmax.f32 %v182_v43, %v183_v46  ;;  %v417_v52 = vmax.f32 %v415_v44, %v416_v47  ;;  %v651_v53 = vmax.f32 %v649_v50, %v650_v49  ;;  %v1111_v54 = vpop.f32.mrf.mxu0  ;;  %v534_v43 = vld [vmem:[#allocation7 + $0x20] sm:$0xff]  ;;  %v535_v47 = vld [vmem:[#allocation7 + $0x28] sm:$0xff]  ;;  %v770_v49 = vld [vmem:[#allocation7 + $0x30] sm:$0xff] }
 0x174   :  { %v886_v59 = vsel %vm96_vm0, %v1111_v54, -inf }
 0x175   :  { %v185_v55 = vrot.slane %v184_v51, 1  ;;  %v418_v56 = vrot.slane %v417_v52, 2  ;;  %v652_v57 = vrot.slane %v651_v53, 4  ;;  %v876_v58 = vpop.f32.mrf.mxu0 }
 0x176   :  { %v885_v60 = vsel %vm96_vm0, %v876_v58, -inf }
 0x177   :  { %v186_v61 = vmax.f32 %v184_v51, %v185_v55  ;;  %v419_v62 = vmax.f32 %v417_v52, %v418_v56  ;;  %v653_v63 = vmax.f32 %v651_v53, %v652_v57  ;;  %v887_v0 = vmax.f32 %v885_v60, %v886_v59 }
 0x179   :  { %v187_v1 = vsub.f32 %v169_v34, %v186_v61  ;;  %v188_v2 = vsub.f32 %v1069_v33, %v186_v61  ;;  %v420_v3 = vrot.slane %v419_v62, 1  ;;  %v654_v4 = vrot.slane %v653_v63, 2  ;;  %v63_v33 = vld [vmem:[#allocation7 + $0x8] sm:$0xff] }
 0x17a   :  { %v888_v5 = vrot.slane %v887_v0, 4 }
 0x17b   :  { %v189_v6 = vmul.f32 1.442695, %v187_v1  ;;  %v191_v7 = vmul.f32 1.442695, %v188_v2  ;;  %v421_v8 = vmax.f32 %v419_v62, %v420_v3  ;;  %v655_v9 = vmax.f32 %v653_v63, %v654_v4 }
 0x17c   :  { %v889_v10 = vmax.f32 %v887_v0, %v888_v5 }
 0x17d   :  { %1126 = vpow2.f32 %v189_v6  ;;  %v422_v11 = vsub.f32 %v404_v40, %v421_v8  ;;  %v423_v12 = vsub.f32 %v1083_v38, %v421_v8  ;;  %v656_v13 = vrot.slane %v655_v9, 1  ;;  %v299_v40 = vld [vmem:[#allocation7 + $0x18] sm:$0xff] }
 0x17e   :  { %1128 = vpow2.f32 %v191_v7  ;;  %v890_v14 = vrot.slane %v889_v10, 2 }
 0x17f   :  { %v424_v15 = vmul.f32 1.442695, %v422_v11  ;;  %v426_v16 = vmul.f32 1.442695, %v423_v12  ;;  %v657_v17 = vmax.f32 %v655_v9, %v656_v13 }
 0x180   :  { %v891_v18 = vmax.f32 %v889_v10, %v890_v14 }
 0x181   :  { %1130 = vpow2.f32 %v424_v15  ;;  %v658_v19 = vsub.f32 %v640_v48, %v657_v17  ;;  %v659_v20 = vsub.f32 %v1097_v45, %v657_v17 }
 0x182   :  { %1132 = vpow2.f32 %v426_v16  ;;  %v892_v21 = vrot.slane %v891_v18, 1 }
 0x183   :  { %v660_v22 = vmul.f32 1.442695, %v658_v19  ;;  %v662_v23 = vmul.f32 1.442695, %v659_v20 }
 0x184   :  { %v893_v24 = vmax.f32 %v891_v18, %v892_v21 }
 0x185   :  { %1134 = vpow2.f32 %v660_v22 }
 0x186   :  { %1136 = vpow2.f32 %v662_v23  ;;  %v894_v25 = vsub.f32 %v876_v58, %v893_v24  ;;  %v895_v26 = vsub.f32 %v1111_v54, %v893_v24  ;;  %v771_v54 = vld [vmem:[#allocation7 + $0x38] sm:$0xff] }
 0x188   :  { %v896_v27 = vmul.f32 1.442695, %v894_v25  ;;  %v898_v28 = vmul.f32 1.442695, %v895_v26 }
 0x18a   :  { %v1127_v29 = vpop.eup %1126  ;;  %1138 = vpow2.f32 %v896_v27 }
 0x18b   :  { %v1129_v30 = vpop.eup %1128  ;;  %1140 = vpow2.f32 %v898_v28  ;;  %v193_v31 = vsel %vm96_vm0, %v1127_v29, 0.0 }
 0x18c   :  { %1070 = vmatprep.subr.mxu1 %v1129_v30  ;;  %v194_v32 = vsel %vm96_vm0, %v1129_v30, 0.0 }
 0x18d   :  { %1071 = vmatpush3.msra.mxu1 %v1129_v30  ;;  %v195_v34 = vadd.f32 %v194_v32, %v193_v31 }
 0x18e   :  { %v1131_v35 = vpop.eup %1130  ;;  %1072 = vmatprep.subr.mxu1 %v1127_v29 }
 0x18f   :  { %v1133_v37 = vpop.eup %1132  ;;  %1073 = vmatpush3.msra.mxu1 %v1127_v29  ;;  %v428_v38 = vsel %vm96_vm0, %v1131_v35, 0.0  ;;  %v196_v56 = vrot.slane %v195_v34, 4 }
 0x190   :  { %1075 = vmatmul.mubr.msk.f32.vlgmr.msra.gmra.mxu1 %vm96_vm0, %v63_v33  ;;  %1084 = vmatprep.subr.mxu1 %v1133_v37  ;;  %v429_v39 = vsel %vm96_vm0, %v1133_v37, 0.0 }
 0x191   :  { %1085 = vmatpush3.msra.mxu1 %v1133_v37  ;;  %1088 = vmatprep.mubr.msk.f32.mxu1 %vm96_vm0, %v298_v36  ;;  %v430_v41 = vadd.f32 %v429_v39, %v428_v38  ;;  %v197_v57 = vadd.f32 %v196_v56, %v195_v34 }
 0x192   :  { %v1135_v42 = vpop.eup %1134  ;;  %1086 = vmatprep.subr.mxu1 %v1131_v35 }
 0x193   :  { %v1137_v44 = vpop.eup %1136  ;;  %1087 = vmatpush3.msra.mxu1 %v1131_v35  ;;  %v664_v45 = vsel %vm96_vm0, %v1135_v42, 0.0  ;;  %v431_v58 = vrot.slane %v430_v41, 4  ;;  %v198_v59 = vrot.slane %v197_v57, 2 }
 0x194   :  { %1089 = vmatmul.mubr.msk.f32.vlgmr.msra.gmra.mxu1 %vm96_vm0, %v299_v40  ;;  %1098 = vmatprep.subr.mxu1 %v1137_v44  ;;  %v665_v46 = vsel %vm96_vm0, %v1137_v44, 0.0 }
 0x195   :  { %1099 = vmatpush3.msra.mxu1 %v1137_v44  ;;  %1102 = vmatprep.mubr.msk.f32.mxu1 %vm96_vm0, %v534_v43  ;;  %v666_v48 = vadd.f32 %v665_v46, %v664_v45  ;;  %v432_v60 = vadd.f32 %v431_v58, %v430_v41  ;;  %v199_v62 = vadd.f32 %v198_v59, %v197_v57 }
 0x196   :  { %1100 = vmatprep.subr.mxu1 %v1135_v42 }
 0x197   :  { %v1139_v50 = vpop.eup %1138  ;;  %1101 = vmatpush3.msra.mxu1 %v1135_v42  ;;  %v667_v61 = vrot.slane %v666_v48, 4  ;;  %v433_v63 = vrot.slane %v432_v60, 2  ;;  %v200_v2 = vrot.slane %v199_v62, 1 }
 0x198   :  { %v1141_v51 = vpop.eup %1140  ;;  %1103 = vmatmul.mubr.msk.f32.vlgmr.msra.gmra.mxu1 %vm96_vm0, %v535_v47  ;;  %v900_v52 = vsel %vm96_vm0, %v1139_v50, 0.0 }
 0x199   :  { %1112 = vmatprep.subr.mxu1 %v1141_v51  ;;  %1116 = vmatprep.mubr.msk.f32.mxu1 %vm96_vm0, %v770_v49  ;;  %v901_v53 = vsel %vm96_vm0, %v1141_v51, 0.0  ;;  %v668_v0 = vadd.f32 %v667_v61, %v666_v48  ;;  %v434_v3 = vadd.f32 %v433_v63, %v432_v60  ;;  %v201_v6 = vadd.f32 %v200_v2, %v199_v62 }
 0x19a   :  { %1113 = vmatpush3.msra.mxu1 %v1141_v51  ;;  %v902_v55 = vadd.f32 %v901_v53, %v900_v52 }
 0x19b   :  { %1114 = vmatprep.subr.mxu1 %v1139_v50  ;;  %v669_v4 = vrot.slane %v668_v0, 2  ;;  %v435_v7 = vrot.slane %v434_v3, 1  ;;  %1142 = vrcp.f32 %v201_v6 }
 0x19c   :  { %1115 = vmatpush3.msra.mxu1 %v1139_v50  ;;  %v903_v1 = vrot.slane %v902_v55, 4 }
 0x19d   :  { %1117 = vmatmul.mubr.msk.f32.vlgmr.msra.gmra.mxu1 %vm96_vm0, %v771_v54  ;;  %v670_v8 = vadd.f32 %v669_v4, %v668_v0  ;;  %v436_v10 = vadd.f32 %v435_v7, %v434_v3 }
 0x19e   :  { %v904_v5 = vadd.f32 %v903_v1, %v902_v55 }
 0x19f   :  { %v671_v11 = vrot.slane %v670_v8, 1  ;;  %1144 = vrcp.f32 %v436_v10 }
 0x1a0   :  { %v905_v9 = vrot.slane %v904_v5, 2 }
 0x1a1   :  { %v672_v13 = vadd.f32 %v671_v11, %v670_v8 }
 0x1a2   :  { %v906_v12 = vadd.f32 %v905_v9, %v904_v5 }
 0x1a3   :  { %1146 = vrcp.f32 %v672_v13 }
 0x1a4   :  { %v907_v14 = vrot.slane %v906_v12, 1 }
 0x1a6   :  { %v908_v15 = vadd.f32 %v907_v14, %v906_v12 }
 0x1a8   :  { %v1143_v16 = vpop.eup %1142  ;;  %1148 = vrcp.f32 %v908_v15 }
 0x1ac   :  { %v1145_v21 = vpop.eup %1144 }
 0x1b0   :  { %v1147_v26 = vpop.eup %1146 }
 0x1b5   :  { %v1149_v31 = vpop.eup %1148 }
 0x250   :  { %v1076_v17 = vpop.f32.mrf.mxu1 }
 0x251   :  { %v286_v18 = vmul.f32 %v1143_v16, %v1076_v17 }
 0x252   :  { %v274_v19 = vpop.f32.mrf.mxu1 }
 0x253   :  { %288 = vst.msk [vmem:[#allocation8 + $0x8] sm:$0xff] %vm96_vm0, %v286_v18  ;;  %v285_v20 = vmul.f32 %v1143_v16, %v274_v19 }
 0x254   :  { %v1090_v22 = vpop.f32.mrf.mxu1 }
 0x255   :  { %287 = vst.msk [vmem:[#allocation8] sm:$0xff] %vm96_vm0, %v285_v20  ;;  %v521_v23 = vmul.f32 %v1145_v21, %v1090_v22 }
 0x256   :  { %v509_v24 = vpop.f32.mrf.mxu1 }
 0x257   :  { %524 = vst.msk [vmem:[#allocation8 + $0x18] sm:$0xff] %vm96_vm0, %v521_v23  ;;  %v520_v25 = vmul.f32 %v1145_v21, %v509_v24 }
 0x258   :  { %v1104_v27 = vpop.f32.mrf.mxu1 }
 0x259   :  { %523 = vst.msk [vmem:[#allocation8 + $0x10] sm:$0xff] %vm96_vm0, %v520_v25  ;;  %v757_v28 = vmul.f32 %v1147_v26, %v1104_v27 }
 0x25a   :  { %v745_v29 = vpop.f32.mrf.mxu1 }
 0x25b   :  { %760 = vst.msk [vmem:[#allocation8 + $0x28] sm:$0xff] %vm96_vm0, %v757_v28  ;;  %v756_v30 = vmul.f32 %v1147_v26, %v745_v29 }
 0x25d   :  { %759 = vst.msk [vmem:[#allocation8 + $0x20] sm:$0xff] %vm96_vm0, %v756_v30  ;;  %v1118_v32 = vpop.f32.mrf.mxu1 }
 0x25e   :  { %v993_v33 = vmul.f32 %v1149_v31, %v1118_v32 }
 0x25f   :  { %v981_v34 = vpop.f32.mrf.mxu1 }
 0x260   :  { %996 = vst.msk [vmem:[#allocation8 + $0x38] sm:$0xff] %vm96_vm0, %v993_v33  ;;  %v992_v35 = vmul.f32 %v1149_v31, %v981_v34 }
 0x262   :  { %995 = vst.msk [vmem:[#allocation8 + $0x30] sm:$0xff] %vm96_vm0, %v992_v35 }
 0x263   :  { %1221 = shalt.err (!%p1218_p5)
}
 0x264   :  { %1008 = dma.vmem_to_hbm [thread:$0]  %s1003_s2, 1024, %s1329_s3, [#allocation4], %s1238_s17, %s1238_s17, %s1239_s18  }
 0x265   :  { %1234 = dma.done.wait [#allocation4], 1024  }
 0x266   :  { %1235 = vsyncadd [#allocation4], 4294966272 }
 0x267   :  { %1012 = vsyncpa [#allocation3], 1 }
 0x268   :  { %1013 = vsyncpa [#allocation6], 1 }
 0x269   :  { %1014 = vsyncpa [#allocation4], 1 }

</bundles_post_ra>
